<compile_context>
chip_gen: v7x
topology: tpu7x:2x2x1
jax: 0.10.0
libtpu: 0.0.40
codegen_flags: <defaults>
</compile_context>

<pallas_src>
import functools

import jax
import jax.numpy as jnp
from jax.experimental import pallas as pl
from jax.experimental.pallas import tpu as pltpu


def _ceil_to(x, m):
    return ((x + m - 1) // m) * m


def _tconv_relu_kernel(x_ref, w_ref, b_ref, o_ref, *, K, S, tT):
    # x_ref: (L, Vp, C_in)       bf16, zero-padded input for one batch element (resident)
    # w_ref: (K, C_in, C_out_p)  bf16, one (C_in, C_out_p) matrix per tap
    # b_ref: (1, C_out_p)        f32 bias
    # o_ref: (tT*Vp, C_out_p)    bf16 output tile (rows time-major, vertex-minor)
    _, Vp, C_in = x_ref.shape

    t = pl.program_id(1)
    base = pl.multiple_of(t * (tT * S), tT * S)   # first padded input row of this tile

    acc = None
    for k in range(K):                            # static unroll over the K taps
        if S == 1:
            tap = x_ref[pl.ds(base + k, tT), :, :]
        else:
            # TODO(synk): strided tap slice (S>1) may lower to a VMEM copy; verify in
            # the Mosaic dump for strided configurations.
            tap = x_ref[pl.ds(base + k, tT, stride=S), :, :]
        # Leading-dim merge only (Vp is a multiple of 8, last dim unchanged) -> free view.
        lhs = tap.reshape(tT * Vp, C_in)
        d = jnp.dot(lhs, w_ref[k], preferred_element_type=jnp.float32)
        acc = d if acc is None else acc + d       # K-1 cheap f32 VPU adds, no lane concat

    out = jnp.maximum(acc + b_ref[...], 0.0)      # bias broadcast + ReLU in f32
    o_ref[...] = out.astype(o_ref.dtype)          # single cast at the store (bf16 out)


def _vmem_estimate(L, Vp, C_in, C_out_p, K, tT, out_itemsize=2):
    in_block = L * Vp * C_in * 2            # bf16 input block (per batch element)
    w_block = K * C_in * C_out_p * 2        # bf16 weights
    b_block = C_out_p * 4                   # f32 bias
    out_block = tT * Vp * C_out_p * out_itemsize
    acc = tT * Vp * C_out_p * 4             # f32 accumulator / epilogue temps
    # Inputs/outputs are double-buffered by the pipeline; 2x the temps for slack.
    return 2 * (in_block + w_block + b_block + out_block) + 2 * acc


def temporal_conv_relu(x, weight, bias, *, kernel_size, stride,
                       time_tile=512, vmem_budget_bytes=40 * 1024 * 1024):
    """Forward of TemporalConvolutionLayer.

    x: (B, C_in, T, V) NCHW; weight: (C_out, C_in, K, 1); bias: (C_out,).
    Returns (B, C_out, T_out, V) in x.dtype.  The contraction runs in bf16 with
    f32 accumulation (differs from an f32 PyTorch conv at ~1e-3 relative).
    """
    B, C_in, T, V = x.shape
    C_out = weight.shape[0]
    K, S = kernel_size, stride
    pad = (K - 1) // 2
    T_out = (T + 2 * pad - K) // S + 1

    Vp = _ceil_to(V, 8)              # 8-sublane alignment -> free in-kernel reshapes
    C_out_p = _ceil_to(C_out, 128)   # lane-dense (unmasked) output stores

    # Largest time tile (multiple of 8) that fits the VMEM budget.
    t_cap = max(8, min(_ceil_to(T_out, 8), _ceil_to(max(8, time_tile), 8)))
    tT = 8
    cand = t_cap
    while cand >= 8:
        n_t_c = pl.cdiv(T_out, cand)
        L_c = max(T + 2 * pad, (n_t_c * cand - 1) * S + K)
        if _vmem_estimate(L_c, Vp, C_in, C_out_p, K, cand) <= vmem_budget_bytes:
            tT = cand
            break
        cand -= 8
    n_t = pl.cdiv(T_out, tT)
    T_out_p = n_t * tT
    # Padded input length: enough rows for every tap of every (padded) output tile.
    L = max(T + 2 * pad, (T_out_p - 1) * S + K)

    # Wrapper-side glue: channels-last, temporal zero pad, V/C padding, one bf16 cast.
    # TODO(synk): keep activations channels-last (B,T,V,C) across layers so the two
    # transposes below (a full HBM pass each) disappear from the end-to-end model.
    x_t = jnp.transpose(x, (0, 2, 3, 1)).astype(jnp.bfloat16)              # (B,T,V,C_in)
    x_p = jnp.pad(x_t, ((0, 0), (pad, L - T - pad), (0, Vp - V), (0, 0)))  # (B,L,Vp,C_in)

    w3 = jnp.transpose(weight[..., 0], (2, 1, 0))                          # (K,C_in,C_out)
    w3 = jnp.pad(w3, ((0, 0), (0, 0), (0, C_out_p - C_out))).astype(jnp.bfloat16)
    b2 = jnp.pad(bias, (0, C_out_p - C_out)).astype(jnp.float32).reshape(1, C_out_p)

    kernel = functools.partial(_tconv_relu_kernel, K=K, S=S, tT=tT)

    est = _vmem_estimate(L, Vp, C_in, C_out_p, K, tT)
    vmem_limit = int(min(64 * 1024 * 1024, max(32 * 1024 * 1024, 2 * est)))

    flops = 2 * B * T_out_p * Vp * K * C_in * C_out_p
    bytes_accessed = (x_p.size * x_p.dtype.itemsize
                      + w3.size * w3.dtype.itemsize
                      + b2.size * b2.dtype.itemsize
                      + B * T_out_p * Vp * C_out_p * 2)

    # TODO(synk): for very long T on v7x (64 MiB VMEM) the per-batch resident input
    # block should become a halo-tiled window (tT*S + K - 1 rows) via pl.Element or
    # manual double-buffered DMA instead of the full-L block.
    # TODO(synk): weights/bias never change across the grid; pipeline_mode=pl.Buffered(1)
    # on their BlockSpecs would drop the useless second buffer once that path is verified.
    out_flat = pl.pallas_call(
        kernel,
        out_shape=jax.ShapeDtypeStruct((B, T_out_p * Vp, C_out_p), jnp.bfloat16),
        grid=(B, n_t),
        in_specs=[
            pl.BlockSpec((None, L, Vp, C_in), lambda b, t: (b, 0, 0, 0)),
            pl.BlockSpec((K, C_in, C_out_p), lambda b, t: (0, 0, 0)),
            pl.BlockSpec((1, C_out_p), lambda b, t: (0, 0)),
        ],
        out_specs=pl.BlockSpec((None, tT * Vp, C_out_p), lambda b, t: (b, t, 0)),
        compiler_params=pltpu.CompilerParams(
            dimension_semantics=("parallel", "parallel"),
            vmem_limit_bytes=vmem_limit),
        cost_estimate=pl.CostEstimate(
            flops=flops, transcendentals=0, bytes_accessed=bytes_accessed),
    )(x_p, w3, b2)

    out = out_flat.reshape(B, T_out_p, Vp, C_out_p)[:, :T_out, :V, :C_out]
    return jnp.transpose(out, (0, 3, 1, 2)).astype(x.dtype)   # (B, C_out, T_out, V)


if __name__ == "__main__":
    def _run_case(key, *, B, C_in, C_out, T, V, K, S, time_tile):
        kx, kw, kb = jax.random.split(key, 3)
        x = jax.random.normal(kx, (B, C_in, T, V), dtype=jnp.float32)
        # Deterministic init mimicking nn.Conv2d default (uniform +/- 1/sqrt(fan_in))
        bound = 1.0 / jnp.sqrt(jnp.float32(C_in * K * 1))
        weight = jax.random.uniform(kw, (C_out, C_in, K, 1), jnp.float32, -bound, bound)
        bias = jax.random.uniform(kb, (C_out,), jnp.float32, -bound, bound)

        out = temporal_conv_relu(x, weight, bias, kernel_size=K, stride=S,
                                 time_tile=time_tile)
        out = jax.block_until_ready(out)

        # Reference: same conv/bias/relu with bf16-rounded matmul operands (the kernel
        # contracts in bf16 with f32 accumulation and stores a bf16 intermediate).
        xq = x.astype(jnp.bfloat16).astype(jnp.float32)
        wq = weight.astype(jnp.bfloat16).astype(jnp.float32)
        pad = (K - 1) // 2
        ref = jax.lax.conv_general_dilated(
            xq, wq, window_strides=(S, 1), padding=((pad, pad), (0, 0)),
            dimension_numbers=("NCHW", "OIHW", "NCHW"))
        ref = jax.nn.relu(ref + bias.reshape(1, C_out, 1, 1))

        assert out.shape == ref.shape, (out.shape, ref.shape)
        err = float(jnp.max(jnp.abs(out - ref)))
        assert jnp.allclose(out, ref, atol=3e-2, rtol=3e-2), err

    key = jax.random.PRNGKey(0)
    k1, k2 = jax.random.split(key)
    # Primary case (module-consistent small shapes); time_tile=8 -> 2 time tiles.
    _run_case(k1, B=2, C_in=4, C_out=8, T=16, V=16, K=3, S=1, time_tile=8)
    # Padding-path case: V not a multiple of 8, T_out not a multiple of the tile, K=5.
    _run_case(k2, B=1, C_in=3, C_out=6, T=19, V=13, K=5, S=1, time_tile=8)
    print("KERNEL_OK")
</pallas_src>

<mosaic_0001>
module attributes {stable_mosaic.version = 11 : i64} {
  func.func @_tconv_relu_kernel(%arg0: i32, %arg1: i32, %arg2: memref<1x18x16x4xbf16, #tpu.memory_space<vmem>>, %arg3: memref<3x4x128xbf16, #tpu.memory_space<vmem>>, %arg4: memref<1x128xf32, #tpu.memory_space<vmem>>, %arg5: memref<1x128x128xbf16, #tpu.memory_space<vmem>>) attributes {dimension_semantics = [#tpu.dimension_semantics<parallel>, #tpu.dimension_semantics<parallel>], iteration_bounds = array<i64: 2, 2>, scalar_prefetch = 0 : i64, scratch_operands = 0 : i64, tpu.core_type = #tpu.core_type<tc>, window_params = [{transform_indices = @transform_0, window_bounds = array<i64: 1, 18, 16, 4>}, {pipeline_mode = #tpu.pipeline_mode<synchronous>, transform_indices = @transform_1, window_bounds = array<i64: 3, 4, 128>}, {pipeline_mode = #tpu.pipeline_mode<synchronous>, transform_indices = @transform_2, window_bounds = array<i64: 1, 128>}, {transform_indices = @transform_3, window_bounds = array<i64: 1, 128, 128>}]} {
    %c8_i32 = arith.constant 8 : i32
    %0 = arith.muli %arg1, %c8_i32 : i32
    %1 = tpu.assume_multiple %0, 8 : i32
    %c0_i32 = arith.constant 0 : i32
    %2 = arith.addi %1, %c0_i32 : i32
    %c0 = arith.constant 0 : index
    %3 = arith.index_cast %2 : i32 to index
    %c0_0 = arith.constant 0 : index
    %c0_1 = arith.constant 0 : index
    %4 = vector.load %arg2[%c0, %3, %c0_0, %c0_1] : memref<1x18x16x4xbf16, #tpu.memory_space<vmem>>, vector<1x8x16x4xbf16>
    %5 = vector.shape_cast %4 : vector<1x8x16x4xbf16> to vector<8x16x4xbf16>
    %6 = vector.shape_cast %5 : vector<8x16x4xbf16> to vector<128x4xbf16>
    %c0_2 = arith.constant 0 : index
    %c0_3 = arith.constant 0 : index
    %c0_4 = arith.constant 0 : index
    %7 = vector.load %arg3[%c0_2, %c0_3, %c0_4] : memref<3x4x128xbf16, #tpu.memory_space<vmem>>, vector<1x4x128xbf16>
    %8 = vector.shape_cast %7 : vector<1x4x128xbf16> to vector<4x128xbf16>
    %cst = arith.constant dense<0.000000e+00> : vector<128x128xf32>
    %9 = tpu.matmul %6, %8, %cst {dimension_numbers = #tpu.dot_dimension_numbers<[1], [0], [0], [1], [0, 0, 1, 1], [], []>} : vector<128x4xbf16>, vector<4x128xbf16>, vector<128x128xf32> -> vector<128x128xf32>
    %c1_i32 = arith.constant 1 : i32
    %10 = arith.addi %1, %c1_i32 : i32
    %c0_5 = arith.constant 0 : index
    %11 = arith.index_cast %10 : i32 to index
    %c0_6 = arith.constant 0 : index
    %c0_7 = arith.constant 0 : index
    %12 = vector.load %arg2[%c0_5, %11, %c0_6, %c0_7] : memref<1x18x16x4xbf16, #tpu.memory_space<vmem>>, vector<1x8x16x4xbf16>
    %13 = vector.shape_cast %12 : vector<1x8x16x4xbf16> to vector<8x16x4xbf16>
    %14 = vector.shape_cast %13 : vector<8x16x4xbf16> to vector<128x4xbf16>
    %c1 = arith.constant 1 : index
    %c0_8 = arith.constant 0 : index
    %c0_9 = arith.constant 0 : index
    %15 = vector.load %arg3[%c1, %c0_8, %c0_9] : memref<3x4x128xbf16, #tpu.memory_space<vmem>>, vector<1x4x128xbf16>
    %16 = vector.shape_cast %15 : vector<1x4x128xbf16> to vector<4x128xbf16>
    %cst_10 = arith.constant dense<0.000000e+00> : vector<128x128xf32>
    %17 = tpu.matmul %14, %16, %cst_10 {dimension_numbers = #tpu.dot_dimension_numbers<[1], [0], [0], [1], [0, 0, 1, 1], [], []>} : vector<128x4xbf16>, vector<4x128xbf16>, vector<128x128xf32> -> vector<128x128xf32>
    %18 = arith.addf %9, %17 : vector<128x128xf32>
    %c2_i32 = arith.constant 2 : i32
    %19 = arith.addi %1, %c2_i32 : i32
    %c0_11 = arith.constant 0 : index
    %20 = arith.index_cast %19 : i32 to index
    %c0_12 = arith.constant 0 : index
    %c0_13 = arith.constant 0 : index
    %21 = vector.load %arg2[%c0_11, %20, %c0_12, %c0_13] : memref<1x18x16x4xbf16, #tpu.memory_space<vmem>>, vector<1x8x16x4xbf16>
    %22 = vector.shape_cast %21 : vector<1x8x16x4xbf16> to vector<8x16x4xbf16>
    %23 = vector.shape_cast %22 : vector<8x16x4xbf16> to vector<128x4xbf16>
    %c2 = arith.constant 2 : index
    %c0_14 = arith.constant 0 : index
    %c0_15 = arith.constant 0 : index
    %24 = vector.load %arg3[%c2, %c0_14, %c0_15] : memref<3x4x128xbf16, #tpu.memory_space<vmem>>, vector<1x4x128xbf16>
    %25 = vector.shape_cast %24 : vector<1x4x128xbf16> to vector<4x128xbf16>
    %cst_16 = arith.constant dense<0.000000e+00> : vector<128x128xf32>
    %26 = tpu.matmul %23, %25, %cst_16 {dimension_numbers = #tpu.dot_dimension_numbers<[1], [0], [0], [1], [0, 0, 1, 1], [], []>} : vector<128x4xbf16>, vector<4x128xbf16>, vector<128x128xf32> -> vector<128x128xf32>
    %27 = arith.addf %18, %26 : vector<128x128xf32>
    %c0_17 = arith.constant 0 : index
    %c0_18 = arith.constant 0 : index
    %28 = vector.load %arg4[%c0_17, %c0_18] : memref<1x128xf32, #tpu.memory_space<vmem>>, vector<1x128xf32>
    %29 = vector.broadcast %28 : vector<1x128xf32> to vector<128x128xf32>
    %30 = arith.addf %27, %29 : vector<128x128xf32>
    %cst_19 = arith.constant 0.000000e+00 : f32
    %31 = vector.broadcast %cst_19 : f32 to vector<128x128xf32>
    %32 = arith.maximumf %30, %31 : vector<128x128xf32>
    %33 = arith.truncf %32 : vector<128x128xf32> to vector<128x128xbf16>
    %c0_20 = arith.constant 0 : index
    %c0_21 = arith.constant 0 : index
    %c0_22 = arith.constant 0 : index
    %34 = vector.load %arg5[%c0_20, %c0_21, %c0_22] : memref<1x128x128xbf16, #tpu.memory_space<vmem>>, vector<1x128x128xbf16>
    %35 = vector.shape_cast %34 : vector<1x128x128xbf16> to vector<128x128xbf16>
    %36 = vector.shape_cast %33 : vector<128x128xbf16> to vector<1x128x128xbf16>
    tpu.vector_store %arg5[%c0_20, %c0_21, %c0_22], %36 {strides = array<i32>} : memref<1x128x128xbf16, #tpu.memory_space<vmem>>, vector<1x128x128xbf16>,
    return
  }
  func.func @transform_0(%arg0: i32, %arg1: i32) -> (i32, i32, i32, i32) {
    %c0_i32 = arith.constant 0 : i32
    %c0_i32_0 = arith.constant 0 : i32
    %c0_i32_1 = arith.constant 0 : i32
    %c0_i32_2 = arith.constant 0 : i32
    return %arg0, %c0_i32, %c0_i32_0, %c0_i32_1 : i32, i32, i32, i32
  }
  func.func @transform_1(%arg0: i32, %arg1: i32) -> (i32, i32, i32) {
    %c0_i32 = arith.constant 0 : i32
    %c0_i32_0 = arith.constant 0 : i32
    %c0_i32_1 = arith.constant 0 : i32
    %c0_i32_2 = arith.constant 0 : i32
    return %c0_i32, %c0_i32_0, %c0_i32_1 : i32, i32, i32
  }
  func.func @transform_2(%arg0: i32, %arg1: i32) -> (i32, i32) {
    %c0_i32 = arith.constant 0 : i32
    %c0_i32_0 = arith.constant 0 : i32
    %c0_i32_1 = arith.constant 0 : i32
    return %c0_i32, %c0_i32_0 : i32, i32
  }
  func.func @transform_3(%arg0: i32, %arg1: i32) -> (i32, i32, i32) {
    %c0_i32 = arith.constant 0 : i32
    %c0_i32_0 = arith.constant 0 : i32
    return %arg0, %arg1, %c0_i32 : i32, i32, i32
  }
}

</mosaic_0001>

<bundles_post_ra>
// kernel: tpu_custom_call.1
= control target key start
LH: loop header
LB: loop body
LE: loop exit
PB: predicated region body
PF: predicated region fallthrough
CT: control target
= control target key end

     0   :  { %8 = vsyncpa [#allocation3], 0  ;;  %s1744_s0 = inlined_call_operand.vmem [shape: bf16[2,18,16,4], index: 0, kind: input, shape index: {}]   ;;  %s1745_s1 = inlined_call_operand.vmem [shape: bf16[3,4,128], index: 1, kind: input, shape index: {}]   ;;  %s1746_s2 = inlined_call_operand.vmem [shape: f32[1,128], index: 2, kind: input, shape index: {}]   ;;  %s1747_s3 = inlined_call_operand.hbm [shape: bf16[2,256,128], index: 3, kind: output, shape index: {}]  }
   0x1   :  { %10 = vsyncpa [#allocation3 + $0x1], 0  ;;  %s1503_s12 = smov 0   ;;  %s1505_s13 = smov 0  }
   0x2   :  { %s1507_s14 = smov 0   ;;  %s1509_s15 = smov 0  }
   0x3   :  { %s1511_s16 = smov 0   ;;  %s1513_s17 = smov 0  }
   0x4   :  { %s1515_s18 = smov 0   ;;  %s1517_s19 = smov 0  }
   0x5 LB: > { %s981_s20 = sadd.s32 4294967295, %s1478_s19   ;;  %s982_s21 = sadd.s32 4294967294, %s1478_s19   ;;  %s1478_s19 = sphi %s1517_s19, %s16_s19   ;;  %s1474_s18 = sphi %s1515_s18, %s1756_s18   ;;  %s1470_s17 = sphi %s1513_s17, %s1755_s17   ;;  %s1466_s16 = sphi %s1511_s16, %s1754_s16   ;;  %s1462_s15 = sphi %s1509_s15, %s1753_s15   ;;  %s1458_s14 = sphi %s1507_s14, %s1752_s14   ;;  %s1454_s13 = sphi %s1505_s13, %s1751_s13   ;;  %s1450_s12 = sphi %s1503_s12, %s1750_s12  }
   0x6   : > { %s25_s22 = sadd.s32 1, %s1470_s17  ;;  %s28_s23 = sadd.s32 1, %s1474_s18 }
   0x7   : > { %p26_p0 = scmp.ge.s32.totalorder %s25_s22, 2  ;;  %p115_p1 = scmp.ne.s32.totalorder %s1458_s14, %s1454_s13 }
   0x8   : > { %p116_p2 = scmp.eq.s32.totalorder %s981_s20, 3  ;;  %p121_p5 = scmp.ne.s32.totalorder %s1454_s13, %s1450_s12 }
   0x9   : > { %s1758_s22 = smov (%p26_p0, %s25_s22), 0  ;;  %s1760_s23 = smov (!%p26_p0, %s28_s23), %s1474_s18 }
   0xa   : > { %s101_s24 = ssub.s32 %s1470_s17, %s1758_s22  ;;  %p1554_p3 = por %p116_p2, %p115_p1 }
   0xb   : > { %p30_p4 = scmp.ge.s32.totalorder %s1760_s23, 2  ;;  %p122_p6 = scmp.eq.s32.totalorder %s982_s21, 3 }
   0xc   : > { %p985_p7 = scmp.ge.s32.totalorder %s1478_s19, 1  ;;  %p154_p9 = scmp.lt.s32.totalorder %s1478_s19, 5 }
   0xd   : > { %s1762_s23 = smov (%p30_p4, %s1760_s23), 0  ;;  %p1563_p8 = por %p122_p6, %p121_p5 }
   0xe   : > { %s100_s27 = ssub.s32 %s1474_s18, %s1762_s23  ;;  %s105_s28 = sadd.s32 1, %s1458_s14 }
   0xf   : > { %s102_s29 = sor.u32 %s101_s24, %s100_s27  ;;  %p155_p10 = pnand %p985_p7, %p154_p9 }
  0x10   : > { %p103_p11 = scmp.eq.s32.totalorder %s102_s29, 0  ;;  %v1009_v0 = vld [vmem:[%s1745_s1 + $0x2] sm:$0x3] (!%p155_p10)  ;;  %vm293_vm0 = vcmask (!%p155_p10), 1041408   ;;  %v205_v1 = vld [vmem:[%s1745_s1] sm:$0x3] (!%p155_p10) }
  0x11   : > { %158 = sbr.rel (%p155_p10) target bundleno = 310 (0x136), region = 32  ;;  %p178_p12 = scmp.lt.s32.totalorder (!%p155_p10), %s1466_s16, 1  ;;  %1282 = vmatprep.subr.msk.bf16.mxu1 (!%p155_p10), %vm293_vm0, %v1009_v0  ;;  %1283 = vmatprep.subr.msk.bf16.mxu0 (!%p155_p10), %vm293_vm0, %v205_v1  ;;  %v295_v2 = vsel (!%p155_p10), %vm293_vm0, %v1009_v0, 0  ;;  %v459_v3 = vsel (!%p155_p10), %vm293_vm0, %v205_v1, 0  ;;  %v1060_v4 = vld [vmem:[%s1745_s1 + $0x4] sm:$0x3] (!%p155_p10) }
  0x12   : > { %s1572_s30 = scalar_select %p103_p11, %s1458_s14, %s105_s28  }
  0x13   : > { %1195 = vmatpush3.bf16.msra.mxu1 (!%p155_p10), %v295_v2  ;;  %1213 = vmatpush3.bf16.msra.mxu0 (!%p155_p10), %v459_v3  ;;  %s1101_s20 = sshll.u32 (!%p155_p10), %s1462_s15, 6  ;;  %vm268_vm1 = vcmask (!%p155_p10), 31744   ;;  %v645_v9 = vsel (!%p155_p10), %vm293_vm0, %v1060_v4, 0  ;;  %v1649_v39 = vld [vmem:[%s1746_s2] ss:$0 sm:$0xff] (!%p155_p10)  ;;  %s175_s5 = sand.u32 (!%p155_p10), 1, %s1454_s13  }
  0x14   : > { %1284 = vmatprep.subr.msk.bf16.mxu1 (!%p155_p10), %vm293_vm0, %v205_v1  ;;  %1285 = vmatprep.subr.msk.bf16.mxu0 (!%p155_p10), %vm293_vm0, %v1060_v4  ;;  %s986_s6 = sshll.u32 (!%p155_p10), %s175_s5, 6  ;;  %s1095_s8 = sshll.u32 (!%p155_p10), %s1462_s15, 4 }
  0x15   : > { %s1658_s7 = scalar_lea.vmem (!%p155_p10), [#allocation2], %s986_s6  ;;  %s1096_s9 = sshll.u32 (!%p155_p10), %s1466_s16, 5 }
  0x16   : > { %s1692_s24 = scalar_lea.sflag (!%p155_p10), [#allocation3], %s175_s5 }
  0x18   : > { %s179_s10 = scalar_select %p178_p12, %s1466_s16, 1 }
  0x19   : > { %s895_s16 = sshll.u32 %s1658_s7, 4  ;;  %s1686_s16 = int_to_ptr.vmem [resolvable:$true] %s895_s16 }
  0x1a   : > { %s1286_s11 = smul.u32 144, %s179_s10  ;;  %s892_s10 = sadd.s32 %s1096_s9, %s1095_s8 }
  0x1b   : > { %s1097_s15 = sshll.u32 %s892_s10, 6 }
  0x1c   : > { %s182_s27 = scalar_lea.vmem %s1744_s0, %s1286_s11  ;;  %s1684_s21 = scalar_lea.hbm %s1747_s3, %s1097_s15 }
  0x1d   : > { %s1595_s28 = scalar_lea.vmem %s182_s27, %s1101_s20  ;;  %s1384_s27 = scalar_lea.vmem %s1686_s16, 1024 }
  0x1e   : > { %v1360_v5 = vld [vmem:[%s1595_s28 + $0x8] sm:$0xff]   ;;  %v1361_v6 = vld [vmem:[%s1595_s28] sm:$0xff]   ;;  %v1362_v7 = vld [vmem:[%s1595_s28 + $0x10] sm:$0xff]   ;;  %p1385_p13 = scmp.ne.s32.totalorder %s1686_s16, %s1384_s27 }
  0x1f   : > { %1196 = vmatprep.mubr.msk.bf16.mxu1 %vm268_vm1, %v1360_v5  ;;  %1214 = vmatprep.mubr.msk.bf16.mxu0 %vm268_vm1, %v1361_v6  ;;  %v1363_v8 = vld [vmem:[%s1595_s28 + $0x8] sm:$0xff]   ;;  %v1364_v10 = vld [vmem:[%s1595_s28 + $0x18] sm:$0xff]   ;;  %v1365_v11 = vld [vmem:[%s1595_s28 + $0x10] sm:$0xff]  }
  0x20   : > { %1197 = vmatmul.mubr.msk.bf16.vlgmr.msra.gmra.mrb[0].mxu1 %vm268_vm1, %v1362_v7  ;;  %1215 = vmatmul.mubr.msk.bf16.vlgmr.msra.gmra.mrb[0].mxu0 %vm268_vm1, %v1363_v8  ;;  %v1366_v12 = vld [vmem:[%s1595_s28 + $0x20] sm:$0xff]   ;;  %v1367_v13 = vld [vmem:[%s1595_s28 + $0x18] sm:$0xff]   ;;  %v1368_v14 = vld [vmem:[%s1595_s28 + $0x28] sm:$0xff]   ;;  %p1386_p0 = pnand %p1385_p13, %p1554_p3 }
  0x21   : > { %1249 = vmatpush3.bf16.msra.mxu1 %v459_v3  ;;  %1231 = vmatpush3.bf16.msra.mxu0 %v645_v9  ;;  %v1369_v15 = vld [vmem:[%s1595_s28 + $0x10] sm:$0xff]   ;;  %v1371_v17 = vld [vmem:[%s1595_s28 + $0x18] sm:$0xff]   ;;  %v1373_v19 = vld [vmem:[%s1595_s28 + $0x20] sm:$0xff]  }
  0x22   : > { %1200 = vmatprep.mubr.msk.bf16.mxu1 %vm268_vm1, %v1364_v10  ;;  %1218 = vmatprep.mubr.msk.bf16.mxu0 %vm268_vm1, %v1365_v11  ;;  %v1370_v16 = vld [vmem:[%s1595_s28 + $0x30] sm:$0xff]   ;;  %v1372_v18 = vld [vmem:[%s1595_s28 + $0x38] sm:$0xff]   ;;  %v1374_v20 = vld [vmem:[%s1595_s28 + $0x40] sm:$0xff]   ;;  %p1387_p1 = pneg %p1386_p0 }
  0x23   : > { %v1375_v21 = vld [vmem:[%s1595_s28 + $0x28] sm:$0xff]   ;;  %v1376_v22 = vld [vmem:[%s1595_s28 + $0x20] sm:$0xff]   ;;  %v1377_v23 = vld [vmem:[%s1595_s28 + $0x30] sm:$0xff]  }
  0x24   : > { %v1378_v24 = vld [vmem:[%s1595_s28 + $0x28] sm:$0xff]   ;;  %v1379_v25 = vld [vmem:[%s1595_s28 + $0x38] sm:$0xff]   ;;  %v1380_v26 = vld [vmem:[%s1595_s28 + $0x30] sm:$0xff]  }
  0x25   : > { %v1381_v27 = vld [vmem:[%s1595_s28 + $0x40] sm:$0xff]   ;;  %v1382_v28 = vld [vmem:[%s1595_s28 + $0x38] sm:$0xff]   ;;  %v1383_v29 = vld [vmem:[%s1595_s28 + $0x48] sm:$0xff]   ;;  %s1480_s28 = smov [#allocation2]  }
  0x26   : > { %s1388_s29 = sshll.u32 %s1480_s28, 4  ;;  %s1389_s29 = int_to_ptr.vmem [resolvable:$false] %s1388_s29 }
  0x27   : > { %s1390_s4 = scalar_lea.vmem %s1389_s29, 2048  ;;  %p1391_p2 = scmp.lt.s32.totalorder %s1686_s16, %s1389_s29 }
  0x28   : > { %1201 = vmatmul.mubr.msk.bf16.gmra.mrb[4].mxu1 %vm268_vm1, %v1366_v12  ;;  %1219 = vmatmul.mubr.msk.bf16.gmra.mrb[4].mxu0 %vm268_vm1, %v1367_v13  ;;  %p1392_p4 = scmp.lt.s32.totalorder %s1390_s4, %s1384_s27 }
  0x29   : > { %1204 = vmatprep.mubr.msk.bf16.mxu1 %vm268_vm1, %v1368_v14  ;;  %1232 = vmatprep.mubr.msk.bf16.mxu0 %vm268_vm1, %v1369_v15 }
  0x2a   : > { %p1393_p5 = por %p1392_p4, %p1391_p2 }
  0x2c   : > { %p1394_p6 = pnand %p1393_p5, %p1387_p1 }
  0x30   : > { %1205 = vmatmul.mubr.msk.bf16.gmra.mrb[8].mxu1 %vm268_vm1, %v1370_v16  ;;  %1233 = vmatmul.mubr.msk.bf16.vlgmr.msra.gmra.mrb[0].mxu0 %vm268_vm1, %v1371_v17 }
  0x31   : > { %1208 = vmatprep.mubr.msk.bf16.mxu1 %vm268_vm1, %v1372_v18  ;;  %1236 = vmatprep.mubr.msk.bf16.mxu0 %vm268_vm1, %v1373_v19 }
  0x38   : > { %1209 = vmatmul.mubr.msk.bf16.gmra.mrb[12].mxu1 %vm268_vm1, %v1374_v20  ;;  %1237 = vmatmul.mubr.msk.bf16.gmra.mrb[4].mxu0 %vm268_vm1, %v1375_v21 }
  0x39   : > { %1222 = vmatprep.mubr.msk.bf16.mxu1 %vm268_vm1, %v1376_v22  ;;  %1240 = vmatprep.mubr.msk.bf16.mxu0 %vm268_vm1, %v1377_v23 }
  0x40   : > { %1223 = vmatmul.mubr.msk.bf16.vlgmr.msra.gmra.mrb[8].mxu1 %vm268_vm1, %v1378_v24  ;;  %1241 = vmatmul.mubr.msk.bf16.gmra.mrb[8].mxu0 %vm268_vm1, %v1379_v25 }
  0x41   : > { %1226 = vmatprep.mubr.msk.bf16.mxu1 %vm268_vm1, %v1380_v26  ;;  %1244 = vmatprep.mubr.msk.bf16.mxu0 %vm268_vm1, %v1381_v27 }
  0x48   : > { %1227 = vmatmul.mubr.msk.bf16.gmra.mrb[12].mxu1 %vm268_vm1, %v1382_v28  ;;  %1245 = vmatmul.mubr.msk.bf16.gmra.mrb[12].mxu0 %vm268_vm1, %v1383_v29 }
  0xf3   : > { %v1198_v30 = vpop.f32.mrb[0].mxu1 }
  0xf4   : > { %v331_v31 = vpop.f32.mrb[1].mxu1 }
  0xf5   : > { %v1199_v32 = vpop.f32.mrb[2].mxu1 }
  0xf6   : > { %v334_v33 = vpop.f32.mrb[3].mxu1 }
  0xfb   : > { %v1202_v34 = vpop.f32.mrb[4].mxu1 }
  0xfc   : > { %v347_v35 = vpop.f32.mrb[5].mxu1 }
  0xfd   : > { %v1203_v36 = vpop.f32.mrb[6].mxu1 }
  0xfe   : > { %v350_v37 = vpop.f32.mrb[7].mxu1 }
 0x103   : > { %v1234_v38 = vpop.f32.mrb[0].mxu0 }
 0x104   : > { %v1250_v40 = vadd.f32 %v1234_v38, %v1198_v30  ;;  %v681_v41 = vpop.f32.mrb[1].mxu0 }
 0x105   : > { %v1251_v42 = vadd.f32 %v681_v41, %v331_v31  ;;  %v1235_v43 = vpop.f32.mrb[2].mxu0 }
 0x106   : > { %v769_v44 = vadd.f32 %v1250_v40, %v1649_v39  ;;  %v1252_v45 = vadd.f32 %v1235_v43, %v1199_v32  ;;  %v684_v46 = vpop.f32.mrb[3].mxu0 }
 0x107   : > { %v767_v47 = vadd.f32 %v1251_v42, %v1649_v39  ;;  %v1253_v48 = vadd.f32 %v684_v46, %v334_v33 }
 0x108   : > { %v770_v49 = vadd.f32 %v1252_v45, %v1649_v39  ;;  %v785_v51 = vmax.f32 %v769_v44, 0.0 }
 0x109   : > { %v768_v50 = vadd.f32 %v1253_v48, %v1649_v39  ;;  %v783_v53 = vmax.f32 %v767_v47, 0.0 }
 0x10a   : > { %v786_v52 = vmax.f32 %v770_v49, 0.0 }
 0x10b   : > { %v784_v54 = vmax.f32 %v768_v50, 0.0  ;;  %v1238_v55 = vpop.f32.mrb[4].mxu0 }
 0x10c   : > { %v1128_v56 = vpack.c.bf16 %v786_v52, %v785_v51  ;;  %v1254_v57 = vadd.f32 %v1238_v55, %v1202_v34  ;;  %v697_v58 = vpop.f32.mrb[5].mxu0 }
 0x10d   : > { %v1123_v59 = vpack.c.bf16 %v784_v54, %v783_v53  ;;  %v1255_v60 = vadd.f32 %v697_v58, %v347_v35  ;;  %v1239_v61 = vpop.f32.mrb[6].mxu0 }
 0x10e   : > { %1160 = vst [vmem:[%s1658_s7 + $0x8] sm:$0xff] %v1128_v56   ;;  %v773_v62 = vadd.f32 %v1254_v57, %v1649_v39  ;;  %v1256_v63 = vadd.f32 %v1239_v61, %v1203_v36  ;;  %v700_v0 = vpop.f32.mrb[7].mxu0 }
 0x10f   : > { %1124 = vst [vmem:[%s1658_s7] sm:$0xff] %v1123_v59   ;;  %v771_v1 = vadd.f32 %v1255_v60, %v1649_v39  ;;  %v1257_v2 = vadd.f32 %v700_v0, %v350_v37 }
 0x110   : > { %v774_v3 = vadd.f32 %v1256_v63, %v1649_v39  ;;  %v789_v5 = vmax.f32 %v773_v62, 0.0 }
 0x111   : > { %v772_v4 = vadd.f32 %v1257_v2, %v1649_v39  ;;  %v787_v8 = vmax.f32 %v771_v1, 0.0 }
 0x112   : > { %v790_v6 = vmax.f32 %v774_v3, 0.0 }
 0x113   : > { %v1224_v7 = vpop.f32.mrb[8].mxu1  ;;  %v788_v9 = vmax.f32 %v772_v4, 0.0  ;;  %v1242_v10 = vpop.f32.mrb[8].mxu0 }
 0x114   : > { %v527_v11 = vpop.f32.mrb[9].mxu1  ;;  %v1138_v12 = vpack.c.bf16 %v790_v6, %v789_v5  ;;  %v1258_v13 = vadd.f32 %v1242_v10, %v1224_v7  ;;  %v713_v14 = vpop.f32.mrb[9].mxu0 }
 0x115   : > { %v1225_v15 = vpop.f32.mrb[10].mxu1  ;;  %v1133_v16 = vpack.c.bf16 %v788_v9, %v787_v8  ;;  %v1259_v17 = vadd.f32 %v713_v14, %v527_v11  ;;  %v1243_v18 = vpop.f32.mrb[10].mxu0 }
 0x116   : > { %v530_v19 = vpop.f32.mrb[11].mxu1  ;;  %1162 = vst [vmem:[%s1658_s7 + $0x18] sm:$0xff] %v1138_v12   ;;  %v777_v20 = vadd.f32 %v1258_v13, %v1649_v39  ;;  %v1260_v21 = vadd.f32 %v1243_v18, %v1225_v15  ;;  %v716_v22 = vpop.f32.mrb[11].mxu0 }
 0x117   : > { %1161 = vst [vmem:[%s1658_s7 + $0x10] sm:$0xff] %v1133_v16   ;;  %v775_v23 = vadd.f32 %v1259_v17, %v1649_v39  ;;  %v1261_v24 = vadd.f32 %v716_v22, %v530_v19 }
 0x118   : > { %v778_v25 = vadd.f32 %v1260_v21, %v1649_v39  ;;  %v793_v27 = vmax.f32 %v777_v20, 0.0 }
 0x119   : > { %v776_v26 = vadd.f32 %v1261_v24, %v1649_v39  ;;  %v791_v30 = vmax.f32 %v775_v23, 0.0 }
 0x11a   : > { %v794_v28 = vmax.f32 %v778_v25, 0.0 }
 0x11b   : > { %v1228_v29 = vpop.f32.mrb[12].mxu1  ;;  %v792_v31 = vmax.f32 %v776_v26, 0.0  ;;  %v1246_v32 = vpop.f32.mrb[12].mxu0 }
 0x11c   : > { %v543_v33 = vpop.f32.mrb[13].mxu1  ;;  %v1148_v34 = vpack.c.bf16 %v794_v28, %v793_v27  ;;  %v1262_v35 = vadd.f32 %v1246_v32, %v1228_v29  ;;  %v729_v36 = vpop.f32.mrb[13].mxu0 }
 0x11d   : > { %v1229_v37 = vpop.f32.mrb[14].mxu1  ;;  %v1143_v38 = vpack.c.bf16 %v792_v31, %v791_v30  ;;  %v1263_v40 = vadd.f32 %v729_v36, %v543_v33  ;;  %v1247_v41 = vpop.f32.mrb[14].mxu0 }
 0x11e   : > { %v546_v42 = vpop.f32.mrb[15].mxu1  ;;  %1164 = vst [vmem:[%s1658_s7 + $0x28] sm:$0xff] %v1148_v34   ;;  %v781_v43 = vadd.f32 %v1262_v35, %v1649_v39  ;;  %v1264_v44 = vadd.f32 %v1247_v41, %v1229_v37  ;;  %v732_v45 = vpop.f32.mrb[15].mxu0 }
 0x11f   : > { %1163 = vst [vmem:[%s1658_s7 + $0x20] sm:$0xff] %v1143_v38   ;;  %v779_v46 = vadd.f32 %v1263_v40, %v1649_v39  ;;  %v1265_v47 = vadd.f32 %v732_v45, %v546_v42 }
 0x120   : > { %v782_v48 = vadd.f32 %v1264_v44, %v1649_v39  ;;  %v797_v50 = vmax.f32 %v781_v43, 0.0 }
 0x121   : > { %v780_v49 = vadd.f32 %v1265_v47, %v1649_v39  ;;  %v795_v52 = vmax.f32 %v779_v46, 0.0 }
 0x122   : > { %v798_v51 = vmax.f32 %v782_v48, 0.0 }
 0x123   : > { %v796_v53 = vmax.f32 %v780_v49, 0.0 }
 0x124   : > { %v1158_v54 = vpack.c.bf16 %v798_v51, %v797_v50 }
 0x125   : > { %v1153_v55 = vpack.c.bf16 %v796_v53, %v795_v52 }
 0x126   : > { %1166 = vst [vmem:[%s1658_s7 + $0x38] sm:$0xff] %v1158_v54  }
 0x127   : > { %1165 = vst [vmem:[%s1658_s7 + $0x30] sm:$0xff] %v1153_v55  }
 0x128   : > { %1397 = shalt.err (!%p1394_p6)
}
 0x129   : > { %s1398_s5 = scalar_lea.hbm %s1684_s21, 1024  ;;  %s1402_s8 = scalar_lea.hbm %s1747_s3, 4096 }
 0x12a   : > { %p1399_p7 = scmp.ne.s32.totalorder %s1684_s21, %s1398_s5  ;;  %p1403_p11 = scmp.lt.u32.totalorder %s1684_s21, %s1747_s3 }
 0x12b   : > { %p1404_p12 = scmp.lt.u32.totalorder %s1402_s8, %s1398_s5  ;;  %p1406_p0 = scmp.lt.u32.totalorder %s1398_s5, %s1684_s21 }
 0x12c   : > { %p1400_p9 = pnand %p1399_p7, %p1554_p3 }
 0x12d   : > { %p1405_p13 = por %p1404_p12, %p1403_p11 }
 0x12e   : > { %p1401_p10 = pneg %p1400_p9 }
 0x12f   : > { %p1407_p1 = por %p1406_p0, %p1405_p13 }
 0x131   : > { %p1408_p2 = pnand %p1407_p1, %p1401_p10 }
 0x133   : > { %1411 = shalt.err (!%p1408_p2)
}
 0x134   : > { %s1481_s15 = smov 64   ;;  %s1482_s11 = smov 4  }
 0x135   : > { %1287 = dma.vmem_to_hbm [thread:$0]  (%p1554_p3), %s1686_s16, 1024, %s1684_s21, %s1692_s24, %s1481_s15, %s1481_s15, %s1482_s11  }
 0x136 PF: > { %p1293_p4 = scmp.ge.s32.totalorder %s1478_s19, 2  ;;  %s910_s20 = sand.u32 1, %s1450_s12  }
 0x137   : > { %s911_s27 = scalar_lea.sflag [#allocation3], %s910_s20 }
 0x138   : > { %p1290_p5 = pnand %p1293_p4, %p1563_p8 }
 0x13a   : > { %1445 = dma.done.wait (!%p1290_p5), %s911_s27, 1024  }
 0x13b   : > { %1447 = vsyncadd (!%p1290_p5), %s911_s27, 4294966272  ;;  %s16_s19 = sadd.s32 1, %s1478_s19   ;;  %s1750_s12 = smov %s1454_s13 }
 0x13c   : > { %p13_p6 = scmp.ge.s32.totalorder %s16_s19, 6   ;;  %s1751_s13 = smov %s1458_s14 }
 0x13d   : > { %s1752_s14 = smov %s1572_s30  ;;  %s1753_s15 = smov %s1470_s17 }
 0x13e   : > { %s1754_s16 = smov %s1474_s18  ;;  %s1755_s17 = smov %s1758_s22 }
 0x13f   : > { %s1756_s18 = smov %s1762_s23  ;;  %15 = sbr.rel (!%p13_p6) target bundleno = 5 (0x5), region = 72 }
 0x146   :  { %916 = vsyncpa [#allocation3], 1 }
 0x147   :  { %918 = vsyncpa [#allocation3 + $0x1], 1 }

</bundles_post_ra>
